<compile_context>
chip_gen: v6e
topology: v6e:2x2x1
jax: 0.10.0
libtpu: 0.0.40
codegen_flags: <defaults>
</compile_context>

<pallas_src>
import jax
import jax.numpy as jnp
from jax.experimental import pallas as pl
from jax.experimental.pallas import tpu as pltpu


def policy_net2_kernel(xt_ref, w1_ref, b1_ref, w2_ref, b2_ref,
                       w3_ref, b3_ref, w5_ref, b5_ref, out_ref):
    """One batch tile, batch mapped to the 128-lane axis.

    xt_ref : [S, tb]   f32 activations (batch columns)
    wN_ref : [out, in] bf16 (torch Linear layout), VMEM-resident
    bN_ref : [out, 1]  f32 (broadcasts across the lane/batch axis)
    out_ref: [A, tb]   f32 softmax probabilities (lane-dense writeback)

    NOTE: every column (batch row) is computed independently. Do NOT add any
    cross-column reduction: the ragged last grid block may contain garbage
    columns that are only masked on writeback.
    """
    x = xt_ref[...].astype(jnp.bfloat16)

    # fc1 + relu   (bf16 MXU operands, f32 accumulate; elementwise stays f32)
    h = jnp.dot(w1_ref[...], x, preferred_element_type=jnp.float32) + b1_ref[...]
    h = jnp.maximum(h, 0.0)
    # fc2 + relu
    h = jnp.dot(w2_ref[...], h.astype(jnp.bfloat16),
                preferred_element_type=jnp.float32) + b2_ref[...]
    h = jnp.maximum(h, 0.0)
    # fc3 + relu
    h = jnp.dot(w3_ref[...], h.astype(jnp.bfloat16),
                preferred_element_type=jnp.float32) + b3_ref[...]
    h = jnp.maximum(h, 0.0)
    # fc5 (fc4 is defined by the torch module but unused in forward)
    logits = jnp.dot(w5_ref[...], h.astype(jnp.bfloat16),
                     preferred_element_type=jnp.float32) + b5_ref[...]

    # Numerically-stable softmax over the action axis (axis 0 = 8 sublanes).
    m = jnp.max(logits, axis=0, keepdims=True)
    e = jnp.exp(logits - m)
    denom = jnp.sum(e, axis=0, keepdims=True)
    # approx=False: exact normalization (rows sum to 1 to f32 precision).
    out_ref[...] = e * pl.reciprocal(denom, approx=False)


def policy_net2_forward(x, params, *, tile_b=2048, single_step_max=4096):
    """x: [B, state_dim] f32. Returns softmax probabilities [B, action_dim] f32.

    params: torch-layout ([out, in]) bf16 weights, [out, 1] f32 biases.
    """
    B, S = x.shape
    A = params["w5"].shape[0]

    # Layout plumbing (not compute): put the batch on the lane axis so the
    # kernel's compute and HBM writeback are lane-dense.
    xt = x.T  # [S, B]

    if B <= single_step_max:
        # Whole batch in a single grid step: the per-step pipeline overhead
        # (~0.35us) would otherwise dominate this tiny MLP.
        tb, steps = B, 1
    else:
        tb = max(128, (tile_b // 128) * 128)       # lane tiles: multiple of 128
        steps = pl.cdiv(B, tb)
        if steps > 1 and steps % 2:
            # Nudge to an even step count so v7x's two TensorCores stay
            # balanced (no effect on single-core v5e/v6e).
            tb_even = ((pl.cdiv(B, steps + 1) + 127) // 128) * 128
            if pl.cdiv(B, tb_even) % 2 == 0:
                tb, steps = tb_even, pl.cdiv(B, tb_even)

    weight_args = (params["w1"], params["b1"], params["w2"], params["b2"],
                   params["w3"], params["b3"], params["w5"], params["b5"])

    # x streams block-by-block along the lane (batch) axis; weights/biases use
    # constant index_maps -> one DMA total, VMEM-resident across all steps.
    in_specs = [pl.BlockSpec((S, tb), lambda i: (0, i))]
    in_specs += [pl.BlockSpec(a.shape, lambda i: (0, 0)) for a in weight_args]

    out_t = pl.pallas_call(
        policy_net2_kernel,
        out_shape=jax.ShapeDtypeStruct((A, B), jnp.float32),
        grid=(steps,),
        in_specs=in_specs,
        out_specs=pl.BlockSpec((A, tb), lambda i: (0, i)),
        compiler_params=pltpu.CompilerParams(
            dimension_semantics=("parallel",) if steps >= 2 else ("arbitrary",)),
    )(xt, *weight_args)

    # Back to the torch module's [B, A] orientation (tiny: A x B f32).
    return out_t.T


def init_params(key, state_dim, hidden_dim, action_dim):
    """Synthetic init mirroring PolicyNet2.__init__ (init_ort=True).

    torch Linear stores weight as [out, in]; we keep that layout (the kernel
    computes W @ x^T). Weights are bf16 (MXU-native, documented accuracy
    choice); biases f32 stored as [out, 1] columns so they broadcast across the
    lane (batch) axis in-kernel. fc4 is created by the torch module but never
    used in forward(), so it is omitted here.
    """
    ortho = jax.nn.initializers.orthogonal()
    ks = jax.random.split(key, 8)

    def weight(k, out_dim, in_dim):
        return ortho(k, (out_dim, in_dim), jnp.float32).astype(jnp.bfloat16)

    def bias(k, n):
        return (jax.random.uniform(k, (n, 1), jnp.float32) - 0.5) * 0.1

    return {
        "w1": weight(ks[0], hidden_dim, state_dim), "b1": bias(ks[1], hidden_dim),
        "w2": weight(ks[2], hidden_dim, hidden_dim), "b2": bias(ks[3], hidden_dim),
        "w3": weight(ks[4], hidden_dim, hidden_dim), "b3": bias(ks[5], hidden_dim),
        "w5": weight(ks[6], action_dim, hidden_dim), "b5": bias(ks[7], action_dim),
    }


if __name__ == "__main__":
    state_dim, hidden_dim, action_dim = 16, 32, 8
    batch = 200   # not a multiple of 8/128: exercises full-block + ragged paths

    key = jax.random.PRNGKey(0)
    kx, kp = jax.random.split(key)
    x = jax.random.normal(kx, (batch, state_dim), jnp.float32)
    params = init_params(kp, state_dim, hidden_dim, action_dim)

    # Default path: whole batch as a single grid step.
    out = policy_net2_forward(x, params)
    out = jax.block_until_ready(out)

    # Tiled path: force 2 grid steps (128 + ragged 72) -> exercises the
    # "parallel" multi-step pipeline and the masked last block.
    out_tiled = policy_net2_forward(x, params, tile_b=128, single_step_max=64)
    out_tiled = jax.block_until_ready(out_tiled)

    # --- references ---------------------------------------------------------
    def lin_bf16(a, w, b):
        return jnp.dot(a.astype(jnp.bfloat16), w.T,
                       preferred_element_type=jnp.float32) + b.reshape(1, -1)

    def ref_bf16(x, p):   # same bf16-operand / f32-accumulate math as the kernel
        h = jax.nn.relu(lin_bf16(x, p["w1"], p["b1"]))
        h = jax.nn.relu(lin_bf16(h, p["w2"], p["b2"]))
        h = jax.nn.relu(lin_bf16(h, p["w3"], p["b3"]))
        return jax.nn.softmax(lin_bf16(h, p["w5"], p["b5"]), axis=1)

    def ref_f32(x, p):    # full-f32 math (what the torch module computes)
        def lin(a, w, b):
            return a @ w.astype(jnp.float32).T + b.reshape(1, -1)
        h = jax.nn.relu(lin(x, p["w1"], p["b1"]))
        h = jax.nn.relu(lin(h, p["w2"], p["b2"]))
        h = jax.nn.relu(lin(h, p["w3"], p["b3"]))
        return jax.nn.softmax(lin(h, p["w5"], p["b5"]), axis=1)

    assert out.shape == (batch, action_dim)
    assert jnp.allclose(out, out_tiled, atol=1e-5), \
        "tiled path mismatch vs single-step path"
    assert jnp.allclose(out, ref_bf16(x, params), atol=5e-3), \
        "mismatch vs bf16-operand reference"
    assert jnp.allclose(out, ref_f32(x, params), atol=5e-2), \
        "mismatch vs f32 reference"
    assert jnp.allclose(jnp.sum(out, axis=1), 1.0, atol=1e-5), \
        "softmax rows do not sum to 1"

    print("KERNEL_OK")
</pallas_src>

<mosaic_0001>
module attributes {stable_mosaic.version = 11 : i64} {
  func.func @policy_net2_kernel(%arg0: i32, %arg1: memref<16x200xf32, #tpu.memory_space<vmem>>, %arg2: memref<32x16xbf16, #tpu.memory_space<vmem>>, %arg3: memref<32x1xf32, #tpu.memory_space<vmem>>, %arg4: memref<32x32xbf16, #tpu.memory_space<vmem>>, %arg5: memref<32x1xf32, #tpu.memory_space<vmem>>, %arg6: memref<32x32xbf16, #tpu.memory_space<vmem>>, %arg7: memref<32x1xf32, #tpu.memory_space<vmem>>, %arg8: memref<8x32xbf16, #tpu.memory_space<vmem>>, %arg9: memref<8x1xf32, #tpu.memory_space<vmem>>, %arg10: memref<8x200xf32, #tpu.memory_space<vmem>>) attributes {dimension_semantics = [#tpu.dimension_semantics<arbitrary>], iteration_bounds = array<i64: 1>, scalar_prefetch = 0 : i64, scratch_operands = 0 : i64, tpu.core_type = #tpu.core_type<tc>, window_params = [{transform_indices = @transform_0, window_bounds = array<i64: 16, 200>}, {pipeline_mode = #tpu.pipeline_mode<synchronous>, transform_indices = @transform_1, window_bounds = array<i64: 32, 16>}, {pipeline_mode = #tpu.pipeline_mode<synchronous>, transform_indices = @transform_2, window_bounds = array<i64: 32, 1>}, {pipeline_mode = #tpu.pipeline_mode<synchronous>, transform_indices = @transform_3, window_bounds = array<i64: 32, 32>}, {pipeline_mode = #tpu.pipeline_mode<synchronous>, transform_indices = @transform_4, window_bounds = array<i64: 32, 1>}, {pipeline_mode = #tpu.pipeline_mode<synchronous>, transform_indices = @transform_5, window_bounds = array<i64: 32, 32>}, {pipeline_mode = #tpu.pipeline_mode<synchronous>, transform_indices = @transform_6, window_bounds = array<i64: 32, 1>}, {pipeline_mode = #tpu.pipeline_mode<synchronous>, transform_indices = @transform_7, window_bounds = array<i64: 8, 32>}, {pipeline_mode = #tpu.pipeline_mode<synchronous>, transform_indices = @transform_8, window_bounds = array<i64: 8, 1>}, {transform_indices = @transform_9, window_bounds = array<i64: 8, 200>}]} {
    %c0 = arith.constant 0 : index
    %c0_0 = arith.constant 0 : index
    %0 = vector.load %arg1[%c0, %c0_0] : memref<16x200xf32, #tpu.memory_space<vmem>>, vector<16x200xf32>
    %1 = arith.truncf %0 : vector<16x200xf32> to vector<16x200xbf16>
    %c0_1 = arith.constant 0 : index
    %c0_2 = arith.constant 0 : index
    %2 = vector.load %arg2[%c0_1, %c0_2] : memref<32x16xbf16, #tpu.memory_space<vmem>>, vector<32x16xbf16>
    %cst = arith.constant dense<0.000000e+00> : vector<32x200xf32>
    %3 = tpu.matmul %2, %1, %cst {dimension_numbers = #tpu.dot_dimension_numbers<[1], [0], [0], [1], [0, 0, 1, 1], [], []>} : vector<32x16xbf16>, vector<16x200xbf16>, vector<32x200xf32> -> vector<32x200xf32>
    %c0_3 = arith.constant 0 : index
    %c0_4 = arith.constant 0 : index
    %4 = vector.load %arg3[%c0_3, %c0_4] : memref<32x1xf32, #tpu.memory_space<vmem>>, vector<32x1xf32>
    %5 = vector.broadcast %4 : vector<32x1xf32> to vector<32x200xf32>
    %6 = arith.addf %3, %5 : vector<32x200xf32>
    %cst_5 = arith.constant 0.000000e+00 : f32
    %7 = vector.broadcast %cst_5 : f32 to vector<32x200xf32>
    %8 = arith.maximumf %6, %7 : vector<32x200xf32>
    %c0_6 = arith.constant 0 : index
    %c0_7 = arith.constant 0 : index
    %9 = vector.load %arg4[%c0_6, %c0_7] : memref<32x32xbf16, #tpu.memory_space<vmem>>, vector<32x32xbf16>
    %10 = arith.truncf %8 : vector<32x200xf32> to vector<32x200xbf16>
    %cst_8 = arith.constant dense<0.000000e+00> : vector<32x200xf32>
    %11 = tpu.matmul %9, %10, %cst_8 {dimension_numbers = #tpu.dot_dimension_numbers<[1], [0], [0], [1], [0, 0, 1, 1], [], []>} : vector<32x32xbf16>, vector<32x200xbf16>, vector<32x200xf32> -> vector<32x200xf32>
    %c0_9 = arith.constant 0 : index
    %c0_10 = arith.constant 0 : index
    %12 = vector.load %arg5[%c0_9, %c0_10] : memref<32x1xf32, #tpu.memory_space<vmem>>, vector<32x1xf32>
    %13 = vector.broadcast %12 : vector<32x1xf32> to vector<32x200xf32>
    %14 = arith.addf %11, %13 : vector<32x200xf32>
    %cst_11 = arith.constant 0.000000e+00 : f32
    %15 = vector.broadcast %cst_11 : f32 to vector<32x200xf32>
    %16 = arith.maximumf %14, %15 : vector<32x200xf32>
    %c0_12 = arith.constant 0 : index
    %c0_13 = arith.constant 0 : index
    %17 = vector.load %arg6[%c0_12, %c0_13] : memref<32x32xbf16, #tpu.memory_space<vmem>>, vector<32x32xbf16>
    %18 = arith.truncf %16 : vector<32x200xf32> to vector<32x200xbf16>
    %cst_14 = arith.constant dense<0.000000e+00> : vector<32x200xf32>
    %19 = tpu.matmul %17, %18, %cst_14 {dimension_numbers = #tpu.dot_dimension_numbers<[1], [0], [0], [1], [0, 0, 1, 1], [], []>} : vector<32x32xbf16>, vector<32x200xbf16>, vector<32x200xf32> -> vector<32x200xf32>
    %c0_15 = arith.constant 0 : index
    %c0_16 = arith.constant 0 : index
    %20 = vector.load %arg7[%c0_15, %c0_16] : memref<32x1xf32, #tpu.memory_space<vmem>>, vector<32x1xf32>
    %21 = vector.broadcast %20 : vector<32x1xf32> to vector<32x200xf32>
    %22 = arith.addf %19, %21 : vector<32x200xf32>
    %cst_17 = arith.constant 0.000000e+00 : f32
    %23 = vector.broadcast %cst_17 : f32 to vector<32x200xf32>
    %24 = arith.maximumf %22, %23 : vector<32x200xf32>
    %c0_18 = arith.constant 0 : index
    %c0_19 = arith.constant 0 : index
    %25 = vector.load %arg8[%c0_18, %c0_19] : memref<8x32xbf16, #tpu.memory_space<vmem>>, vector<8x32xbf16>
    %26 = arith.truncf %24 : vector<32x200xf32> to vector<32x200xbf16>
    %cst_20 = arith.constant dense<0.000000e+00> : vector<8x200xf32>
    %27 = tpu.matmul %25, %26, %cst_20 {dimension_numbers = #tpu.dot_dimension_numbers<[1], [0], [0], [1], [0, 0, 1, 1], [], []>} : vector<8x32xbf16>, vector<32x200xbf16>, vector<8x200xf32> -> vector<8x200xf32>
    %c0_21 = arith.constant 0 : index
    %c0_22 = arith.constant 0 : index
    %28 = vector.load %arg9[%c0_21, %c0_22] : memref<8x1xf32, #tpu.memory_space<vmem>>, vector<8x1xf32>
    %29 = vector.broadcast %28 : vector<8x1xf32> to vector<8x200xf32>
    %30 = arith.addf %27, %29 : vector<8x200xf32>
    %cst_23 = arith.constant dense<0xFF800000> : vector<200xf32>
    %31 = vector.multi_reduction <maximumf>, %30, %cst_23 [0] : vector<8x200xf32> to vector<200xf32>
    %32 = vector.shape_cast %31 : vector<200xf32> to vector<1x200xf32>
    %33 = vector.broadcast %32 : vector<1x200xf32> to vector<8x200xf32>
    %34 = arith.subf %30, %33 : vector<8x200xf32>
    %35 = math.exp %34 : vector<8x200xf32>
    %cst_24 = arith.constant dense<0.000000e+00> : vector<200xf32>
    %36 = vector.multi_reduction <add>, %35, %cst_24 [0] : vector<8x200xf32> to vector<200xf32>
    %37 = vector.shape_cast %36 : vector<200xf32> to vector<1x200xf32>
    %38 = tpu.reciprocal %37 : vector<1x200xf32> -> vector<1x200xf32>
    %39 = vector.broadcast %38 : vector<1x200xf32> to vector<8x200xf32>
    %40 = arith.mulf %35, %39 : vector<8x200xf32>
    %c0_25 = arith.constant 0 : index
    %c0_26 = arith.constant 0 : index
    %41 = vector.load %arg10[%c0_25, %c0_26] : memref<8x200xf32, #tpu.memory_space<vmem>>, vector<8x200xf32>
    tpu.vector_store %arg10[%c0_25, %c0_26], %40 {strides = array<i32>} : memref<8x200xf32, #tpu.memory_space<vmem>>, vector<8x200xf32>,
    return
  }
  func.func @transform_0(%arg0: i32) -> (i32, i32) {
    %c0_i32 = arith.constant 0 : i32
    %c0_i32_0 = arith.constant 0 : i32
    return %c0_i32, %arg0 : i32, i32
  }
  func.func @transform_1(%arg0: i32) -> (i32, i32) {
    %c0_i32 = arith.constant 0 : i32
    %c0_i32_0 = arith.constant 0 : i32
    %c0_i32_1 = arith.constant 0 : i32
    return %c0_i32, %c0_i32_0 : i32, i32
  }
  func.func @transform_2(%arg0: i32) -> (i32, i32) {
    %c0_i32 = arith.constant 0 : i32
    %c0_i32_0 = arith.constant 0 : i32
    %c0_i32_1 = arith.constant 0 : i32
    return %c0_i32, %c0_i32_0 : i32, i32
  }
  func.func @transform_3(%arg0: i32) -> (i32, i32) {
    %c0_i32 = arith.constant 0 : i32
    %c0_i32_0 = arith.constant 0 : i32
    %c0_i32_1 = arith.constant 0 : i32
    return %c0_i32, %c0_i32_0 : i32, i32
  }
  func.func @transform_4(%arg0: i32) -> (i32, i32) {
    %c0_i32 = arith.constant 0 : i32
    %c0_i32_0 = arith.constant 0 : i32
    %c0_i32_1 = arith.constant 0 : i32
    return %c0_i32, %c0_i32_0 : i32, i32
  }
  func.func @transform_5(%arg0: i32) -> (i32, i32) {
    %c0_i32 = arith.constant 0 : i32
    %c0_i32_0 = arith.constant 0 : i32
    %c0_i32_1 = arith.constant 0 : i32
    return %c0_i32, %c0_i32_0 : i32, i32
  }
  func.func @transform_6(%arg0: i32) -> (i32, i32) {
    %c0_i32 = arith.constant 0 : i32
    %c0_i32_0 = arith.constant 0 : i32
    %c0_i32_1 = arith.constant 0 : i32
    return %c0_i32, %c0_i32_0 : i32, i32
  }
  func.func @transform_7(%arg0: i32) -> (i32, i32) {
    %c0_i32 = arith.constant 0 : i32
    %c0_i32_0 = arith.constant 0 : i32
    %c0_i32_1 = arith.constant 0 : i32
    return %c0_i32, %c0_i32_0 : i32, i32
  }
  func.func @transform_8(%arg0: i32) -> (i32, i32) {
    %c0_i32 = arith.constant 0 : i32
    %c0_i32_0 = arith.constant 0 : i32
    %c0_i32_1 = arith.constant 0 : i32
    return %c0_i32, %c0_i32_0 : i32, i32
  }
  func.func @transform_9(%arg0: i32) -> (i32, i32) {
    %c0_i32 = arith.constant 0 : i32
    %c0_i32_0 = arith.constant 0 : i32
    return %c0_i32, %arg0 : i32, i32
  }
}

</mosaic_0001>

<bundles_post_ra>
// kernel: tpu_custom_call.1
= control target key start
LH: loop header
LB: loop body
LE: loop exit
PB: predicated region body
PF: predicated region fallthrough
CT: control target
= control target key end

     0   :  { %v526_v5 = vmov 0   ;;  %vm78_vm0 = vcmask 130048   ;;  %s672_s0 = inlined_call_operand.vmem [shape: f32[16,200], index: 0, kind: input, shape index: {}]   ;;  %s673_s1 = inlined_call_operand.vmem [shape: bf16[32,16], index: 1, kind: input, shape index: {}]   ;;  %s674_s2 = inlined_call_operand.vmem [shape: f32[32,1], index: 2, kind: input, shape index: {}]   ;;  %s675_s3 = inlined_call_operand.vmem [shape: bf16[32,32], index: 3, kind: input, shape index: {}]   ;;  %s676_s4 = inlined_call_operand.vmem [shape: f32[32,1], index: 4, kind: input, shape index: {}]   ;;  %s677_s5 = inlined_call_operand.vmem [shape: bf16[32,32], index: 5, kind: input, shape index: {}]   ;;  %s678_s6 = inlined_call_operand.vmem [shape: f32[32,1], index: 6, kind: input, shape index: {}]   ;;  %s679_s7 = inlined_call_operand.vmem [shape: bf16[8,32], index: 7, kind: input, shape index: {}]   ;;  %s680_s8 = inlined_call_operand.vmem [shape: f32[8,1], index: 8, kind: input, shape index: {}]   ;;  %s681_s9 = inlined_call_operand.hbm [shape: f32[8,200], index: 9, kind: output, shape index: {}]  }
   0x1   :  { %v35_v0 = vld [vmem:[%s672_s0 + $0x8] sm:$0xff]  ;;  %v37_v1 = vld [vmem:[%s672_s0 + $0x18] sm:$0xff]  ;;  %v34_v2 = vld [vmem:[%s672_s0] sm:$0xff]  ;;  %117 = vmatprep.mubr.bf16.mxu0 %v526_v5  ;;  %488 = vset.pattern.permute.xlu0 %v526_v5 }
   0x2   :  { %v39_v3 = vpack.c.bf16 %v37_v1, %v35_v0  ;;  %v36_v4 = vld [vmem:[%s672_s0 + $0x10] sm:$0xff]  ;;  %489 = vset.pattern.permute.xlu1 %v526_v5  ;;  %227 = vmatprep.mubr.bf16.mxu1 %v526_v5  ;;  %v490_v7 = vld [vmem:[%s673_s1] sm:$0xff]   ;;  %v47_v10 = vld [vmem:[%s674_s2 + $0x18] sm:$0xff] }
   0x3   :  { %v38_v6 = vpack.c.bf16 %v36_v4, %v34_v2  ;;  %v46_v8 = vld [vmem:[%s674_s2 + $0x10] sm:$0xff]  ;;  %v44_v9 = vld [vmem:[%s674_s2] sm:$0xff]  ;;  %v45_v11 = vld [vmem:[%s674_s2 + $0x8] sm:$0xff] }
   0x4   :  { %99 = vmatprep.subr.bf16.mxu0 %v39_v3  ;;  %60 = vperm.xlu0 %488, %v46_v8   ;;  %v156_v12 = vld [vmem:[%s676_s4 + $0x10] sm:$0xff]  ;;  %v157_v13 = vld [vmem:[%s676_s4 + $0x18] sm:$0xff] }
   0x5   :  { %100 = vmatpush1.bf16.msra.mxu0 %v38_v6  ;;  %50 = vperm.xlu1 %489, %v44_v9  }
   0x8   :  { %475 = vmatmul.mubr.msk.bf16.vlgmr.msra.gmra.mxu0 %vm78_vm0, %v490_v7  ;;  %65 = vperm.xlu0 %488, %v47_v10  }
   0x9   :  { %127 = vmatprep.mubr.bf16.mxu0 %v526_v5  ;;  %55 = vperm.xlu1 %489, %v45_v11  }
   0xa   :  { %14 = vsyncpa [#allocation3], 0  ;;  %v491_v14 = vld [vmem:[%s673_s1 + $0x8] sm:$0xff]   ;;  %v154_v15 = vld [vmem:[%s676_s4] sm:$0xff]  ;;  %vm188_vm1 = vcmask 261120   ;;  %vm426_vm2 = vcmask 588800  }
   0xb   :  { %v155_v16 = vld [vmem:[%s676_s4 + $0x8] sm:$0xff]  ;;  %v266_v17 = vld [vmem:[%s678_s6 + $0x10] sm:$0xff]  ;;  %v267_v18 = vld [vmem:[%s678_s6 + $0x18] sm:$0xff] }
   0xc   :  { %170 = vperm.xlu0 %488, %v156_v12   ;;  %v264_v19 = vld [vmem:[%s678_s6] sm:$0xff]  ;;  %v265_v20 = vld [vmem:[%s678_s6 + $0x8] sm:$0xff] }
   0xd   :  { %175 = vperm.xlu1 %489, %v157_v13   ;;  %v370_v21 = vld [vmem:[%s680_s8] sm:$0xff]  ;;  %v493_v55 = vld [vmem:[%s675_s3 + $0x8] sm:$0xff]  }
   0xe   :  { %v492_v54 = vld [vmem:[%s675_s3] sm:$0xff]  }
  0x10   :  { %476 = vmatmul.mubr.msk.bf16.gmra.mxu0 %vm78_vm0, %v491_v14  ;;  %160 = vperm.xlu0 %488, %v154_v15  }
  0x11   :  { %336 = vmatprep.mubr.bf16.mxu0 %v526_v5  ;;  %165 = vperm.xlu1 %489, %v155_v16  }
  0x14   :  { %280 = vperm.xlu0 %488, %v266_v17  }
  0x15   :  { %285 = vperm.xlu1 %489, %v267_v18  }
  0x18   :  { %270 = vperm.xlu0 %488, %v264_v19  }
  0x19   :  { %275 = vperm.xlu1 %489, %v265_v20  }
  0x1c   :  { %373 = vperm.xlu0 %488, %v370_v21  }
  0x7f   :  { %v61_v25 = vpop.permute.xlu0 %60 }
  0x80   :  { %v51_v26 = vpop.permute.xlu1 %50 }
  0x83   :  { %v66_v30 = vpop.permute.xlu0 %65 }
  0x84   :  { %v56_v31 = vpop.permute.xlu1 %55 }
  0x87   :  { %v171_v61 = vpop.permute.xlu0 %170 }
  0x88   :  { %v176_v59 = vpop.permute.xlu1 %175 }
  0x8b   :  { %v161_v6 = vpop.permute.xlu0 %160 }
  0x8c   :  { %v166_v0 = vpop.permute.xlu1 %165 }
  0xc8   :  { %v119_v22 = vpop.f32.mrf.mxu0 }
  0xc9   :  { %v120_v45 = vadd.f32 %v119_v22, %v51_v26 }
  0xca   :  { %v121_v23 = vpop.f32.mrf.mxu0 }
  0xcb   :  { %v122_v38 = vadd.f32 %v121_v23, %v51_v26  ;;  %v138_v52 = vmax.f32 %v120_v45, 0.0  ;;  %v495_v26 = vld [vmem:[%s677_s5 + $0x8] sm:$0xff]  }
  0xcc   :  { %v123_v24 = vpop.f32.mrf.mxu0 }
  0xcd   :  { %v124_v40 = vadd.f32 %v123_v24, %v56_v31  ;;  %v139_v47 = vmax.f32 %v122_v38, 0.0 }
  0xce   :  { %v125_v27 = vpop.f32.mrf.mxu0 }
  0xcf   :  { %v126_v33 = vadd.f32 %v125_v27, %v56_v31  ;;  %v140_v49 = vmax.f32 %v124_v40, 0.0 }
  0xd0   :  { %v129_v28 = vpop.f32.mrf.mxu0 }
  0xd1   :  { %v130_v36 = vadd.f32 %v129_v28, %v61_v25  ;;  %v141_v42 = vmax.f32 %v126_v33, 0.0  ;;  %v150_v53 = vpack.c.bf16 %v140_v49, %v138_v52 }
  0xd2   :  { %v131_v29 = vpop.f32.mrf.mxu0 }
  0xd3   :  { %v132_v34 = vadd.f32 %v131_v29, %v61_v25  ;;  %v142_v46 = vmax.f32 %v130_v36, 0.0  ;;  %v151_v51 = vpack.c.bf16 %v141_v42, %v139_v47  ;;  %v494_v25 = vld [vmem:[%s677_s5] sm:$0xff]  }
  0xd4   :  { %v133_v32 = vpop.f32.mrf.mxu0 }
  0xd5   :  { %v134_v35 = vadd.f32 %v133_v32, %v66_v30  ;;  %v143_v43 = vmax.f32 %v132_v34, 0.0  ;;  %v281_v32 = vpop.permute.xlu0 %280 }
  0xd6   :  { %v135_v37 = vpop.f32.mrf.mxu0 }
  0xd7   :  { %v136_v39 = vadd.f32 %v135_v37, %v66_v30  ;;  %v144_v41 = vmax.f32 %v134_v35, 0.0  ;;  %v286_v30 = vpop.permute.xlu1 %285 }
  0xd9   :  { %v145_v44 = vmax.f32 %v136_v39, 0.0  ;;  %v152_v50 = vpack.c.bf16 %v144_v41, %v142_v46 }
  0xdb   :  { %v153_v48 = vpack.c.bf16 %v145_v44, %v143_v43  ;;  %v276_v35 = vpop.permute.xlu1 %275 }
  0xdd   :  { %207 = vmatprep.subr.bf16.mxu1 %v153_v48 }
  0xde   :  { %208 = vmatpush1.bf16.msra.mxu1 %v152_v50 }
  0xdf   :  { %209 = vmatprep.subr.bf16.mxu1 %v151_v51 }
  0xe2   :  { %210 = vmatpush1.bf16.msra.mxu1 %v150_v53 }
  0xe5   :  { %479 = vmatmul.mubr.msk.bf16.vlgmr.msra.gmra.mxu1 %vm188_vm1, %v492_v54 }
  0xe6   :  { %237 = vmatprep.mubr.bf16.mxu1 %v526_v5 }
  0xed   :  { %480 = vmatmul.mubr.msk.bf16.gmra.mxu1 %vm188_vm1, %v493_v55 }
  0xee   :  { %411 = vmatprep.mubr.bf16.mxu1 %v526_v5 }
 0x1a5   :  { %v229_v56 = vpop.f32.mrf.mxu1 }
 0x1a6   :  { %v230_v16 = vadd.f32 %v229_v56, %v161_v6 }
 0x1a7   :  { %v231_v57 = vpop.f32.mrf.mxu1 }
 0x1a8   :  { %v232_v9 = vadd.f32 %v231_v57, %v161_v6  ;;  %v248_v23 = vmax.f32 %v230_v16, 0.0 }
 0x1a9   :  { %v233_v58 = vpop.f32.mrf.mxu1 }
 0x1aa   :  { %v234_v11 = vadd.f32 %v233_v58, %v166_v0  ;;  %v249_v18 = vmax.f32 %v232_v9, 0.0  ;;  %v365_v58 = vld [vmem:[%s679_s7] sm:$0xf]  ;;  %s527_s7 = smov [#allocation2]  }
 0x1ab   :  { %v235_v60 = vpop.f32.mrf.mxu1  ;;  %s465_s27 = sshll.u32 %s527_s7, 4  ;;  %s466_s27 = int_to_ptr.vmem [resolvable:$true] %s465_s27 }
 0x1ac   :  { %v236_v2 = vadd.f32 %v235_v60, %v166_v0  ;;  %v250_v20 = vmax.f32 %v234_v11, 0.0  ;;  %s504_s28 = scalar_lea.vmem %s466_s27, 256  ;;  %p509_p1 = scmp.lt.s32.totalorder %s466_s27, %s466_s27 }
 0x1ad   :  { %v239_v62 = vpop.f32.mrf.mxu1  ;;  %p505_p0 = scmp.ne.s32.totalorder %s466_s27, %s504_s28  ;;  %p510_p2 = scmp.lt.s32.totalorder %s504_s28, %s504_s28 }
 0x1ae   :  { %v240_v7 = vadd.f32 %v239_v62, %v171_v61  ;;  %v251_v13 = vmax.f32 %v236_v2, 0.0  ;;  %v260_v24 = vpack.c.bf16 %v250_v20, %v248_v23 }
 0x1af   :  { %v241_v63 = vpop.f32.mrf.mxu1  ;;  %p511_p3 = por %p510_p2, %p509_p1 }
 0x1b0   :  { %v242_v3 = vadd.f32 %v241_v63, %v171_v61  ;;  %v252_v17 = vmax.f32 %v240_v7, 0.0  ;;  %v261_v22 = vpack.c.bf16 %v251_v13, %v249_v18 }
 0x1b1   :  { %v243_v1 = vpop.f32.mrf.mxu1  ;;  %p512_p4 = pnand %p511_p3, %p505_p0 }
 0x1b2   :  { %v244_v4 = vadd.f32 %v243_v1, %v176_v59  ;;  %v253_v14 = vmax.f32 %v242_v3, 0.0 }
 0x1b3   :  { %v245_v8 = vpop.f32.mrf.mxu1 }
 0x1b4   :  { %v246_v10 = vadd.f32 %v245_v8, %v176_v59  ;;  %v254_v12 = vmax.f32 %v244_v4, 0.0 }
 0x1b6   :  { %v255_v15 = vmax.f32 %v246_v10, 0.0  ;;  %v262_v21 = vpack.c.bf16 %v254_v12, %v252_v17 }
 0x1b8   :  { %v263_v19 = vpack.c.bf16 %v255_v15, %v253_v14 }
 0x1ba   :  { %316 = vmatprep.subr.bf16.mxu0 %v263_v19 }
 0x1bb   :  { %317 = vmatpush1.bf16.msra.mxu0 %v262_v21 }
 0x1bc   :  { %318 = vmatprep.subr.bf16.mxu0 %v261_v22 }
 0x1bf   :  { %319 = vmatpush1.bf16.msra.mxu0 %v260_v24 }
 0x1c2   :  { %483 = vmatmul.mubr.msk.bf16.vlgmr.msra.gmra.mxu0 %vm188_vm1, %v494_v25 }
 0x1c3   :  { %346 = vmatprep.mubr.bf16.mxu0 %v526_v5  ;;  %v271_v5 = vpop.permute.xlu0 %270 }
 0x1c7   :  { %v374_v59 = vpop.permute.xlu0 %373 }
 0x1ca   :  { %484 = vmatmul.mubr.msk.bf16.gmra.mxu0 %vm188_vm1, %v495_v26 }
 0x282   :  { %v338_v27 = vpop.f32.mrf.mxu0 }
 0x283   :  { %v339_v49 = vadd.f32 %v338_v27, %v271_v5 }
 0x284   :  { %v340_v28 = vpop.f32.mrf.mxu0 }
 0x285   :  { %v341_v42 = vadd.f32 %v340_v28, %v271_v5  ;;  %v357_v56 = vmax.f32 %v339_v49, 0.0 }
 0x286   :  { %v342_v29 = vpop.f32.mrf.mxu0 }
 0x287   :  { %v343_v44 = vadd.f32 %v342_v29, %v276_v35  ;;  %v358_v51 = vmax.f32 %v341_v42, 0.0 }
 0x288   :  { %v344_v31 = vpop.f32.mrf.mxu0 }
 0x289   :  { %v345_v37 = vadd.f32 %v344_v31, %v276_v35  ;;  %v359_v53 = vmax.f32 %v343_v44, 0.0 }
 0x28a   :  { %v348_v33 = vpop.f32.mrf.mxu0 }
 0x28b   :  { %v349_v40 = vadd.f32 %v348_v33, %v281_v32  ;;  %v360_v46 = vmax.f32 %v345_v37, 0.0  ;;  %v366_v57 = vpack.c.bf16 %v359_v53, %v357_v56 }
 0x28c   :  { %v350_v34 = vpop.f32.mrf.mxu0 }
 0x28d   :  { %v351_v38 = vadd.f32 %v350_v34, %v281_v32  ;;  %v361_v50 = vmax.f32 %v349_v40, 0.0  ;;  %v367_v55 = vpack.c.bf16 %v360_v46, %v358_v51 }
 0x28e   :  { %v352_v36 = vpop.f32.mrf.mxu0 }
 0x28f   :  { %v353_v39 = vadd.f32 %v352_v36, %v286_v30  ;;  %v362_v47 = vmax.f32 %v351_v38, 0.0 }
 0x290   :  { %v354_v41 = vpop.f32.mrf.mxu0 }
 0x291   :  { %v355_v43 = vadd.f32 %v354_v41, %v286_v30  ;;  %v363_v45 = vmax.f32 %v353_v39, 0.0 }
 0x293   :  { %v364_v48 = vmax.f32 %v355_v43, 0.0  ;;  %v368_v54 = vpack.c.bf16 %v363_v45, %v361_v50 }
 0x295   :  { %v369_v52 = vpack.c.bf16 %v364_v48, %v362_v47 }
 0x297   :  { %391 = vmatprep.subr.bf16.mxu1 %v369_v52 }
 0x298   :  { %392 = vmatpush1.bf16.msra.mxu1 %v368_v54 }
 0x299   :  { %393 = vmatprep.subr.bf16.mxu1 %v367_v55 }
 0x29c   :  { %394 = vmatpush1.bf16.msra.mxu1 %v366_v57 }
 0x29f   :  { %485 = vmatmul.mubr.msk.bf16.vlgmr.msra.gmra.mxu1 %vm188_vm1, %v365_v58 }
 0x35f   :  { %v413_v60 = vpop.f32.mrf.mxu1 }
 0x360   :  { %v414_v61 = vadd.f32 %v413_v60, %v374_v59 }
 0x361   :  { %v415_v62 = vpop.f32.mrf.mxu1 }
 0x362   :  { %v420_v63 = vrot.slane %v414_v61, 4  ;;  %v416_v0 = vadd.f32 %v415_v62, %v374_v59 }
 0x363   :  { %v417_v1 = vpop.f32.mrf.mxu1 }
 0x364   :  { %v421_v2 = vmax.f32 %v414_v61, %v420_v63  ;;  %v427_v3 = vsel %vm426_vm2, %v416_v0, -inf }
 0x365   :  { %v428_v4 = vrot.slane %v427_v3, 4  ;;  %v418_v6 = vpop.f32.mrf.mxu1 }
 0x366   :  { %v422_v7 = vrot.slane %v421_v2, 2 }
 0x367   :  { %v429_v8 = vmax.f32 %v427_v3, %v428_v4 }
 0x368   :  { %v423_v9 = vmax.f32 %v421_v2, %v422_v7 }
 0x369   :  { %v430_v10 = vrot.slane %v429_v8, 2 }
 0x36a   :  { %v424_v11 = vrot.slane %v423_v9, 1 }
 0x36b   :  { %v431_v12 = vmax.f32 %v429_v8, %v430_v10 }
 0x36c   :  { %v425_v13 = vmax.f32 %v423_v9, %v424_v11 }
 0x36d   :  { %v432_v14 = vrot.slane %v431_v12, 1 }
 0x36e   :  { %v434_v15 = vsub.f32 %v414_v61, %v425_v13 }
 0x36f   :  { %v433_v16 = vmax.f32 %v431_v12, %v432_v14 }
 0x370   :  { %v436_v17 = vmul.f32 1.442695, %v434_v15 }
 0x371   :  { %v435_v18 = vsub.f32 %v416_v0, %v433_v16 }
 0x372   :  { %496 = vpow2.f32 %v436_v17 }
 0x373   :  { %v438_v19 = vmul.f32 1.442695, %v435_v18 }
 0x375   :  { %498 = vpow2.f32 %v438_v19 }
 0x37f   :  { %v497_v20 = vpop.eup %496 }
 0x380   :  { %v440_v21 = vrot.slane %v497_v20, 4 }
 0x382   :  { %v499_v22 = vpop.eup %498  ;;  %v441_v23 = vadd.f32 %v497_v20, %v440_v21 }
 0x383   :  { %v446_v24 = vsel %vm426_vm2, %v499_v22, 0.0 }
 0x384   :  { %v447_v25 = vrot.slane %v446_v24, 4  ;;  %v442_v26 = vrot.slane %v441_v23, 2 }
 0x386   :  { %v448_v27 = vadd.f32 %v447_v25, %v446_v24  ;;  %v443_v28 = vadd.f32 %v442_v26, %v441_v23 }
 0x388   :  { %v449_v29 = vrot.slane %v448_v27, 2  ;;  %v444_v30 = vrot.slane %v443_v28, 1 }
 0x38a   :  { %v450_v31 = vadd.f32 %v449_v29, %v448_v27  ;;  %v445_v32 = vadd.f32 %v444_v30, %v443_v28 }
 0x38c   :  { %v451_v33 = vrot.slane %v450_v31, 1  ;;  %500 = vrcp.f32 %v445_v32 }
 0x38e   :  { %v452_v34 = vadd.f32 %v451_v33, %v450_v31 }
 0x390   :  { %502 = vrcp.f32 %v452_v34 }
 0x399   :  { %v501_v35 = vpop.eup %500 }
 0x39a   :  { %v455_v36 = vmul.f32 %v501_v35, %v497_v20 }
 0x39c   :  { %457 = vst [vmem:[#allocation2] sm:$0xff] %v455_v36 }
 0x39d   :  { %v503_v37 = vpop.eup %502 }
 0x39e   :  { %v456_v38 = vmul.f32 %v503_v37, %v499_v22 }
 0x3a0   :  { %458 = vst.msk [vmem:[#allocation2 + $0x8] sm:$0xff] %vm426_vm2, %v456_v38 }
 0x3a1   :  { %515 = shalt.err (!%p512_p4)
}
 0x3a2   :  { %468 = dma.vmem_to_hbm [thread:$0]  %s466_s27, 256, %s681_s9, [#allocation3]  }
 0x3a3   :  { %524 = dma.done.wait [#allocation3], 256  }
 0x3a4   :  { %525 = vsyncadd [#allocation3], 4294967040 }
 0x3a5   :  { %472 = vsyncpa [#allocation3], 1 }

</bundles_post_ra>
